<compile_context>
chip_gen: v7x
topology: tpu7x:2x2x1
jax: 0.10.0
libtpu: 0.0.40
codegen_flags: <defaults>
</compile_context>

<pallas_src>
import functools

import jax
import jax.numpy as jnp
from jax.experimental import pallas as pl
from jax.experimental.pallas import tpu as pltpu

IN = 20
HIDDEN = 256
OUT = 10


def _round_up(x, m):
    return ((x + m - 1) // m) * m


def mlp_kernel(x_ref, w1_ref, b1_ref, w2_ref, b2_ref, o_ref):
    # hidden = relu(x @ W1 + b1)   -- bf16 operands, f32 accumulation
    h = jnp.dot(x_ref[...], w1_ref[...], preferred_element_type=jnp.float32)
    h = jnp.maximum(h + b1_ref[...], 0.0)            # (TB,256)+(1,256) VPU bcast
    # out = h @ W2 + b2            -- feed MXU bf16 again, accumulate f32
    o = jnp.dot(h.astype(jnp.bfloat16), w2_ref[...],
                preferred_element_type=jnp.float32)
    o_ref[...] = (o + b2_ref[...]).astype(o_ref.dtype)   # true-width (TB,10) store


def pack_params(w1_t, b1_t, w2_t, b2_t):
    """Pack PyTorch-layout params ONCE (hoisted out of the per-call path).

    PyTorch layout: w1 (256,20), b1 (256,), w2 (10,256), b2 (10,).
    Returns (w1 (20,256) bf16, b1 (1,256) f32, w2 (256,10) bf16, b2 (1,10) f32).
    """
    w1 = jnp.asarray(w1_t, jnp.float32).T.astype(jnp.bfloat16)
    w2 = jnp.asarray(w2_t, jnp.float32).T.astype(jnp.bfloat16)
    b1 = jnp.asarray(b1_t, jnp.float32).reshape(1, -1)
    b2 = jnp.asarray(b2_t, jnp.float32).reshape(1, -1)
    return w1, b1, w2, b2


@functools.partial(jax.jit, static_argnames=("block_b",))
def mlp_forward(x, w1, b1, w2, b2, *, block_b=2048):
    """x: (B, 20) f32; packed params from pack_params()."""
    B, K = x.shape

    # ---- batch tiling: multiple of 8 sublanes, capped at block_b rows -------
    B8 = _round_up(B, 8)
    TB = min(block_b, B8)
    # Give v7x's two TensorCores >= 2 grid steps when the batch is big enough.
    if B8 >= 16 and B8 // TB < 2:
        TB = min(TB, _round_up((B8 + 1) // 2, 8))
    B_pad = _round_up(B8, TB)

    # ---- minimal input plumbing: bf16 cast, pad batch only if needed --------
    x_bf = x.astype(jnp.bfloat16)
    if B_pad != B:
        x_bf = jnp.pad(x_bf, ((0, B_pad - B), (0, 0)))

    out = pl.pallas_call(
        mlp_kernel,
        out_shape=jax.ShapeDtypeStruct((B_pad, OUT), jnp.float32),
        grid_spec=pl.GridSpec(
            grid=(B_pad // TB,),
            in_specs=[
                pl.BlockSpec((TB, K), lambda i: (i, 0)),       # x tile
                pl.BlockSpec(w1.shape, lambda i: (0, 0)),      # W1 resident
                pl.BlockSpec(b1.shape, lambda i: (0, 0)),      # b1 resident
                pl.BlockSpec(w2.shape, lambda i: (0, 0)),      # W2 resident
                pl.BlockSpec(b2.shape, lambda i: (0, 0)),      # b2 resident
            ],
            out_specs=pl.BlockSpec((TB, OUT), lambda i: (i, 0)),
        ),
        compiler_params=pltpu.CompilerParams(
            dimension_semantics=("parallel",),   # shard batch across TCs (v7x)
        ),
    )(x_bf, w1, b1, w2, b2)

    # Only trim batch padding (cheap / usually a no-op); lanes are already 10.
    return out if B_pad == B else out[:B]


def init_torch_layout_params(key):
    """Deterministic synthetic init matching nn.Linear(20,256), nn.Linear(256,10)."""
    k1, k2, k3, k4 = jax.random.split(key, 4)
    s1 = 1.0 / jnp.sqrt(IN)
    s2 = 1.0 / jnp.sqrt(HIDDEN)
    w1 = jax.random.uniform(k1, (HIDDEN, IN), jnp.float32, -s1, s1)    # (256,20)
    b1 = jax.random.uniform(k2, (HIDDEN,), jnp.float32, -s1, s1)       # (256,)
    w2 = jax.random.uniform(k3, (OUT, HIDDEN), jnp.float32, -s2, s2)   # (10,256)
    b2 = jax.random.uniform(k4, (OUT,), jnp.float32, -s2, s2)          # (10,)
    return w1, b1, w2, b2


if __name__ == "__main__":
    key = jax.random.PRNGKey(0)
    kx, kp = jax.random.split(key)

    # X = torch.randn(size=(2, 20))
    x = jax.random.normal(kx, (2, IN), dtype=jnp.float32)
    w1_t, b1_t, w2_t, b2_t = init_torch_layout_params(kp)

    # Pack once (model-creation time), reuse for every forward call.
    w1, b1, w2, b2 = pack_params(w1_t, b1_t, w2_t, b2_t)

    out = mlp_forward(x, w1, b1, w2, b2)
    out = jax.block_until_ready(out)
    assert out.shape == (2, OUT)

    # Reference using the same bf16-operand / f32-accumulate math.
    ref_bf16 = (
        jnp.dot(
            jnp.maximum(
                jnp.dot(x.astype(jnp.bfloat16), w1, preferred_element_type=jnp.float32)
                + b1, 0.0
            ).astype(jnp.bfloat16),
            w2, preferred_element_type=jnp.float32,
        ) + b2
    )
    assert jnp.allclose(out, ref_bf16, atol=1e-3, rtol=1e-3)

    # Sanity check against the full-f32 PyTorch-style reference (loose tol for bf16).
    ref_f32 = jnp.maximum(x @ w1_t.T + b1_t, 0.0) @ w2_t.T + b2_t
    assert jnp.allclose(out, ref_f32, atol=5e-2, rtol=5e-2)

    print("KERNEL_OK")
</pallas_src>

<mosaic_0001>
module attributes {stable_mosaic.version = 11 : i64} {
  func.func @mlp_kernel(%arg0: i32, %arg1: memref<8x20xbf16, #tpu.memory_space<vmem>>, %arg2: memref<20x256xbf16, #tpu.memory_space<vmem>>, %arg3: memref<1x256xf32, #tpu.memory_space<vmem>>, %arg4: memref<256x10xbf16, #tpu.memory_space<vmem>>, %arg5: memref<1x10xf32, #tpu.memory_space<vmem>>, %arg6: memref<8x10xf32, #tpu.memory_space<vmem>>) attributes {dimension_semantics = [#tpu.dimension_semantics<parallel>], iteration_bounds = array<i64: 1>, scalar_prefetch = 0 : i64, scratch_operands = 0 : i64, tpu.core_type = #tpu.core_type<tc>, window_params = [{transform_indices = @transform_0, window_bounds = array<i64: 8, 20>}, {pipeline_mode = #tpu.pipeline_mode<synchronous>, transform_indices = @transform_1, window_bounds = array<i64: 20, 256>}, {pipeline_mode = #tpu.pipeline_mode<synchronous>, transform_indices = @transform_2, window_bounds = array<i64: 1, 256>}, {pipeline_mode = #tpu.pipeline_mode<synchronous>, transform_indices = @transform_3, window_bounds = array<i64: 256, 10>}, {pipeline_mode = #tpu.pipeline_mode<synchronous>, transform_indices = @transform_4, window_bounds = array<i64: 1, 10>}, {transform_indices = @transform_5, window_bounds = array<i64: 8, 10>}]} {
    %c0 = arith.constant 0 : index
    %c0_0 = arith.constant 0 : index
    %0 = vector.load %arg1[%c0, %c0_0] : memref<8x20xbf16, #tpu.memory_space<vmem>>, vector<8x20xbf16>
    %c0_1 = arith.constant 0 : index
    %c0_2 = arith.constant 0 : index
    %1 = vector.load %arg2[%c0_1, %c0_2] : memref<20x256xbf16, #tpu.memory_space<vmem>>, vector<20x256xbf16>
    %cst = arith.constant dense<0.000000e+00> : vector<8x256xf32>
    %2 = tpu.matmul %0, %1, %cst {dimension_numbers = #tpu.dot_dimension_numbers<[1], [0], [0], [1], [0, 0, 1, 1], [], []>} : vector<8x20xbf16>, vector<20x256xbf16>, vector<8x256xf32> -> vector<8x256xf32>
    %c0_3 = arith.constant 0 : index
    %c0_4 = arith.constant 0 : index
    %3 = vector.load %arg3[%c0_3, %c0_4] : memref<1x256xf32, #tpu.memory_space<vmem>>, vector<1x256xf32>
    %4 = vector.broadcast %3 : vector<1x256xf32> to vector<8x256xf32>
    %5 = arith.addf %2, %4 : vector<8x256xf32>
    %cst_5 = arith.constant 0.000000e+00 : f32
    %6 = vector.broadcast %cst_5 : f32 to vector<8x256xf32>
    %7 = arith.maximumf %5, %6 : vector<8x256xf32>
    %8 = arith.truncf %7 : vector<8x256xf32> to vector<8x256xbf16>
    %c0_6 = arith.constant 0 : index
    %c0_7 = arith.constant 0 : index
    %9 = vector.load %arg4[%c0_6, %c0_7] : memref<256x10xbf16, #tpu.memory_space<vmem>>, vector<256x10xbf16>
    %cst_8 = arith.constant dense<0.000000e+00> : vector<8x10xf32>
    %10 = tpu.matmul %8, %9, %cst_8 {dimension_numbers = #tpu.dot_dimension_numbers<[1], [0], [0], [1], [0, 0, 1, 1], [], []>} : vector<8x256xbf16>, vector<256x10xbf16>, vector<8x10xf32> -> vector<8x10xf32>
    %c0_9 = arith.constant 0 : index
    %c0_10 = arith.constant 0 : index
    %11 = vector.load %arg5[%c0_9, %c0_10] : memref<1x10xf32, #tpu.memory_space<vmem>>, vector<1x10xf32>
    %12 = vector.broadcast %11 : vector<1x10xf32> to vector<8x10xf32>
    %13 = arith.addf %10, %12 : vector<8x10xf32>
    %c0_11 = arith.constant 0 : index
    %c0_12 = arith.constant 0 : index
    %14 = vector.load %arg6[%c0_11, %c0_12] : memref<8x10xf32, #tpu.memory_space<vmem>>, vector<8x10xf32>
    tpu.vector_store %arg6[%c0_11, %c0_12], %13 {strides = array<i32>} : memref<8x10xf32, #tpu.memory_space<vmem>>, vector<8x10xf32>,
    return
  }
  func.func @transform_0(%arg0: i32) -> (i32, i32) {
    %c0_i32 = arith.constant 0 : i32
    %c0_i32_0 = arith.constant 0 : i32
    return %arg0, %c0_i32 : i32, i32
  }
  func.func @transform_1(%arg0: i32) -> (i32, i32) {
    %c0_i32 = arith.constant 0 : i32
    %c0_i32_0 = arith.constant 0 : i32
    %c0_i32_1 = arith.constant 0 : i32
    return %c0_i32, %c0_i32_0 : i32, i32
  }
  func.func @transform_2(%arg0: i32) -> (i32, i32) {
    %c0_i32 = arith.constant 0 : i32
    %c0_i32_0 = arith.constant 0 : i32
    %c0_i32_1 = arith.constant 0 : i32
    return %c0_i32, %c0_i32_0 : i32, i32
  }
  func.func @transform_3(%arg0: i32) -> (i32, i32) {
    %c0_i32 = arith.constant 0 : i32
    %c0_i32_0 = arith.constant 0 : i32
    %c0_i32_1 = arith.constant 0 : i32
    return %c0_i32, %c0_i32_0 : i32, i32
  }
  func.func @transform_4(%arg0: i32) -> (i32, i32) {
    %c0_i32 = arith.constant 0 : i32
    %c0_i32_0 = arith.constant 0 : i32
    %c0_i32_1 = arith.constant 0 : i32
    return %c0_i32, %c0_i32_0 : i32, i32
  }
  func.func @transform_5(%arg0: i32) -> (i32, i32) {
    %c0_i32 = arith.constant 0 : i32
    %c0_i32_0 = arith.constant 0 : i32
    return %arg0, %c0_i32 : i32, i32
  }
}

</mosaic_0001>

<bundles_post_ra>
// kernel: mlp_forward.1
= control target key start
LH: loop header
LB: loop body
LE: loop exit
PB: predicated region body
PF: predicated region fallthrough
CT: control target
= control target key end

     0   :  { %v356_v1 = vmov 0   ;;  %vm56_vm0 = vcmask 1041408   ;;  %vm52_vm1 = vcmask 162816   ;;  %v27_v24 = vlaneseq  ;;  %s456_s1 = inlined_call_operand.vmem [shape: bf16[20,256], index: 1, kind: input, shape index: {}]   ;;  %s457_s3 = inlined_call_operand.vmem [shape: bf16[256,10], index: 3, kind: input, shape index: {}]   ;;  %s458_s0 = inlined_call_operand.vmem [shape: bf16[8,20], index: 0, kind: input, shape index: {}]   ;;  %s459_s2 = inlined_call_operand.vmem [shape: f32[1,256], index: 2, kind: input, shape index: {}]   ;;  %s460_s4 = inlined_call_operand.vmem [shape: f32[1,10], index: 4, kind: input, shape index: {}]   ;;  %s461_s5 = inlined_call_operand.vmem [shape: f32[8,10], index: 5, kind: output, shape index: {}]  }
   0x1   :  { %v24_v0 = vld [vmem:[%s456_s1 + $0x10] sm:$0x33]  ;;  %95 = vmatprep.mubr.bf16.mxu0 %v356_v1  ;;  %v335_v2 = vld [vmem:[%s456_s1 + $0x4] ss:$8 sps:$4 sm:$0xff]   ;;  %v338_v4 = vld [vmem:[%s456_s1] ss:$8 sps:$4 sm:$0xff]  }
   0x2   :  { %v292_v3 = vcombine.high %v24_v0, %v24_v0  ;;  %v291_v5 = vcombine.low %v24_v0, %v24_v0  ;;  %v340_v6 = vld [vmem:[%s457_s3 + $0x40] sm:$0xff]   ;;  %63 = vmatprep.subr.bf16.mxu0 %v335_v2  ;;  %v342_v8 = vld [vmem:[%s457_s3 + $0x48] sm:$0xff]   ;;  %v344_v11 = vld [vmem:[%s457_s3 + $0x50] sm:$0xff]   ;;  %v28_v25 = vshrl.u32 %v27_v24, 7  ;;  %vm283_vm2 = vcmask 80896  }
   0x3   :  { %v341_v7 = vld [vmem:[%s457_s3] sm:$0xff]   ;;  %64 = vmatpush1.bf16.msra.mxu0 %v338_v4  ;;  %312 = vmatprep.subr.bf16.mxu1 %v340_v6  ;;  %v343_v10 = vld [vmem:[%s457_s3 + $0x8] sm:$0xff]   ;;  %v345_v13 = vld [vmem:[%s457_s3 + $0x10] sm:$0xff]  }
   0x4   :  { %293 = vmatprep.subr.msk.bf16.mxu0 %vm56_vm0, %v292_v3  ;;  %v58_v9 = vsel %vm56_vm0, %v291_v5, 0  ;;  %313 = vmatpush3.bf16.msra.mxu1 %v341_v7  ;;  %v21_v12 = vld [vmem:[%s458_s0] sm:$0xf]  ;;  %v346_v14 = vld [vmem:[%s457_s3 + $0x58] sm:$0xff]   ;;  %v350_v18 = vld [vmem:[%s457_s3 + $0x68] sm:$0xff]   ;;  %v29_v26 = vsub.s32 0, %v28_v25 }
   0x5   :  { %314 = vmatprep.subr.bf16.mxu1 %v342_v8  ;;  %v347_v15 = vld [vmem:[%s457_s3 + $0x18] sm:$0xff]   ;;  %v348_v16 = vld [vmem:[%s457_s3 + $0x60] sm:$0xff]   ;;  %v351_v19 = vld [vmem:[%s457_s3 + $0x28] sm:$0xff]   ;;  %v33_v28 = vsub.s32 1, %v28_v25 }
   0x6   :  { %v349_v17 = vld [vmem:[%s457_s3 + $0x20] sm:$0xff]   ;;  %v352_v20 = vld [vmem:[%s457_s3 + $0x70] sm:$0xff]   ;;  %v354_v22 = vld [vmem:[%s457_s3 + $0x78] sm:$0xff]  }
   0x7   :  { %66 = vmatpush1.bf16.msra.mxu0 %v58_v9  ;;  %v353_v21 = vld [vmem:[%s457_s3 + $0x30] sm:$0xff]   ;;  %v355_v23 = vld [vmem:[%s457_s3 + $0x38] sm:$0xff]   ;;  %v25_v27 = vld [vmem:[%s459_s2] sm:$0x3] }
   0x8   :  { %315 = vmatpush3.bf16.msra.mxu1 %v343_v10  ;;  %v30_v29 = vrot.slane %v25_v27, %v29_v26  ;;  %v34_v30 = vrot.slane %v25_v27, %v33_v28  ;;  %v295_v42 = vld [vmem:[%s460_s4] ss:$0 sm:$0xff] }
   0x9   :  { %316 = vmatprep.subr.bf16.mxu1 %v344_v11 }
   0xa   :  { %294 = vmatmul.mubr.msk.bf16.vlgmr.msra.gmra.mrb[0].mxu0 %vm52_vm1, %v21_v12 }
   0xc   :  { %317 = vmatpush3.bf16.msra.mxu1 %v345_v13 }
   0xd   :  { %318 = vmatprep.subr.bf16.mxu1 %v346_v14 }
  0x10   :  { %319 = vmatpush3.bf16.msra.mxu1 %v347_v15 }
  0x11   :  { %320 = vmatprep.subr.bf16.mxu1 %v348_v16 }
  0x14   :  { %321 = vmatpush3.bf16.msra.mxu1 %v349_v17 }
  0x15   :  { %322 = vmatprep.subr.bf16.mxu1 %v350_v18 }
  0x18   :  { %323 = vmatpush3.bf16.msra.mxu1 %v351_v19 }
  0x19   :  { %324 = vmatprep.subr.bf16.mxu1 %v352_v20 }
  0x1c   :  { %325 = vmatpush3.bf16.msra.mxu1 %v353_v21 }
  0x1d   :  { %326 = vmatprep.subr.bf16.mxu1 %v354_v22 }
  0x20   :  { %327 = vmatpush3.bf16.msra.mxu1 %v355_v23 }
  0xdd   :  { %v97_v31 = vpop.f32.mrb[0].mxu0 }
  0xde   :  { %v98_v32 = vadd.f32 %v97_v31, %v30_v29  ;;  %v99_v33 = vpop.f32.mrb[1].mxu0 }
  0xdf   :  { %v100_v34 = vadd.f32 %v99_v33, %v34_v30  ;;  %v101_v35 = vpop.f32.mrb[2].mxu0 }
  0xe0   :  { %v104_v36 = vmax.f32 %v98_v32, 0.0  ;;  %v102_v37 = vpop.f32.mrb[3].mxu0 }
  0xe1   :  { %v105_v38 = vmax.f32 %v100_v34, 0.0 }
  0xe2   :  { %v106_v40 = vpack.c.bf16 %v104_v36, %v104_v36 }
  0xe3   :  { %v107_v39 = vpack.c.bf16 %v105_v38, %v105_v38 }
  0xe5   :  { %275 = vmatprep.mubr.bf16.mxu1 %v107_v39 }
  0xe6   :  { %276 = vmatmul.mubr.bf16.vlgmr.msra.gmra.mrb[0].mxu1 %v106_v40 }
 0x1b9   :  { %v328_v41 = vpop.f32.mrb[0].mxu1 }
 0x1ba   :  { %v329_v43 = vpop.f32.mrb[1].mxu1 }
 0x1bb   :  { %v330_v44 = vadd.f32 %v329_v43, %v328_v41  ;;  %v331_v45 = vpop.f32.mrb[2].mxu1 }
 0x1bc   :  { %v332_v46 = vpop.f32.mrb[3].mxu1 }
 0x1bd   :  { %v278_v47 = vadd.f32 %v330_v44, %v295_v42 }
 0x1bf   :  { %284 = vst.msk [vmem:[%s461_s5] sm:$0xff] %vm283_vm2, %v278_v47 }

</bundles_post_ra>
